<compile_context>
chip_gen: v5e
topology: v5e:2x2
jax: 0.10.0
libtpu: 0.0.40
codegen_flags: <defaults>
</compile_context>

<pallas_src>
import functools
import math

import jax
import jax.numpy as jnp
from jax.experimental import pallas as pl
from jax.experimental.pallas import tpu as pltpu


# ------------------------------ Pallas kernel ------------------------------

def _graphconv_kernel(x_ref, w_ref, adj_blk_ref, diag_ref, shift_ref, o_ref,
                      *, cout, apply_relu):
    """Fused SemGraphConv + (folded) BN + ReLU for one batch-row tile.

    x_ref:       (Bt*J, Cin)
    w_ref:       (Cin, 2*Cout)   = [W0 * bn_scale | W1 * bn_scale]
    adj_blk_ref: (Bt*J, Bt*J)    block-diagonal replication of off-diag adj
    diag_ref:    (Bt*J, 1)       softmaxed adjacency diagonal (per row)
    shift_ref:   (1, Cout)       bias*bn_scale + bn_shift
    o_ref:       (Bt*J, Cout)
    """
    # Single feature matmul on the MXU (W0 and W1 concatenated along lanes).
    h = jnp.dot(x_ref[...], w_ref[...], preferred_element_type=jnp.float32)
    h0 = h[:, :cout]          # x @ (W0 * scale)
    h1 = h[:, cout:]          # x @ (W1 * scale)

    # Diagonal part of adj is a per-row scale (VPU), not a matmul.
    out = diag_ref[...] * h0
    # Off-diagonal aggregation for the whole batch tile in one MXU matmul.
    out = out + jnp.dot(adj_blk_ref[...], h1,
                        preferred_element_type=jnp.float32)
    # Folded bias + BN shift.
    out = out + shift_ref[...]
    if apply_relu:
        out = jnp.maximum(out, 0.0)
    o_ref[...] = out.astype(o_ref.dtype)


def graphconv_apply(x, folded, *, batch_tile=8, apply_relu=True):
    """x: (B, J, Cin) -> (B, J, Cout) using the fused kernel."""
    B, J, Cin = x.shape
    w01 = folded["w01"]
    shift = folded["shift"]
    adj_off = folded["adj_off"]
    adj_diag = folded["adj_diag"]
    Cout = shift.shape[-1]

    bt = max(1, min(batch_tile, B))
    n_tiles = pl.cdiv(B, bt)
    Bp = n_tiles * bt
    if Bp != B:
        x = jnp.pad(x, ((0, Bp - B), (0, 0), (0, 0)))
    rows = bt * J

    # Fold batch into the matmul M dimension (rows = batch * joints).
    x2 = x.reshape(Bp * J, Cin)
    # Shared (J, J) off-diagonal adjacency, replicated block-diagonally so one
    # (rows, rows) matmul aggregates the whole batch tile.
    adj_blk = jnp.kron(jnp.eye(bt, dtype=jnp.float32), adj_off)
    diag_blk = jnp.tile(adj_diag, (bt,)).reshape(rows, 1)

    kernel = functools.partial(_graphconv_kernel, cout=Cout,
                               apply_relu=apply_relu)
    out2 = pl.pallas_call(
        kernel,
        out_shape=jax.ShapeDtypeStruct((Bp * J, Cout), jnp.float32),
        grid=(n_tiles,),
        in_specs=[
            pl.BlockSpec((rows, Cin), lambda b: (b, 0)),       # x rows
            pl.BlockSpec((Cin, 2 * Cout), lambda b: (0, 0)),   # W0|W1 (BN folded)
            pl.BlockSpec((rows, rows), lambda b: (0, 0)),      # block-diag adj_off
            pl.BlockSpec((rows, 1), lambda b: (0, 0)),         # adj diagonal
            pl.BlockSpec((1, Cout), lambda b: (0, 0)),         # fused shift
        ],
        out_specs=pl.BlockSpec((rows, Cout), lambda b: (b, 0)),
        compiler_params=pltpu.CompilerParams(
            dimension_semantics=("parallel",)),
    )(x2, w01, adj_blk, diag_blk, shift.reshape(1, Cout))
    return out2.reshape(Bp, J, Cout)[:B]


# --------------------------- parameters / folding ---------------------------

def _xavier_uniform(key, shape, gain):
    # torch.nn.init.xavier_uniform_ on (2, in, out): fan_in=in, fan_out=out
    fan_in, fan_out = shape[-2], shape[-1]
    a = gain * math.sqrt(6.0 / (fan_in + fan_out))
    return jax.random.uniform(key, shape, jnp.float32, -a, a)


def make_graphconv_params(key, in_features, out_features, adj):
    """Mirror of _GraphConv(adj, in_features, out_features) construction."""
    kW, kb = jax.random.split(key)
    W = _xavier_uniform(kW, (2, in_features, out_features), gain=1.414)
    stdv = 1.0 / math.sqrt(out_features)
    bias = jax.random.uniform(kb, (out_features,), jnp.float32, -stdv, stdv)

    # e parameter (one per nonzero adjacency entry), init constant 1.0,
    # scattered back into the -9e15-masked dense logits (as in the torch code).
    mask = adj > 0
    n_edges = int(jnp.count_nonzero(mask))
    e = jnp.ones((n_edges,), jnp.float32)
    rows, cols = jnp.nonzero(mask, size=n_edges)
    adj_logits = jnp.full(adj.shape, -9.0e15, jnp.float32).at[rows, cols].set(e)

    # BatchNorm1d(out_features) defaults, eval mode.
    bn = dict(gamma=jnp.ones((out_features,), jnp.float32),
              beta=jnp.zeros((out_features,), jnp.float32),
              mean=jnp.zeros((out_features,), jnp.float32),
              var=jnp.ones((out_features,), jnp.float32),
              eps=1e-5)
    return dict(W=W, bias=bias, adj_logits=adj_logits, bn=bn)


def fold_graphconv_params(params):
    """Precompute all batch-invariant work: adjacency softmax + diag/off-diag
    split, and BN affine + bias folded into the weights / one shift vector."""
    W, bias, logits, bn = (params["W"], params["bias"],
                           params["adj_logits"], params["bn"])
    scale = bn["gamma"] / jnp.sqrt(bn["var"] + bn["eps"])
    bn_shift = bn["beta"] - bn["mean"] * scale
    w01 = jnp.concatenate([W[0] * scale[None, :], W[1] * scale[None, :]],
                          axis=1)                          # (Cin, 2*Cout)
    shift_total = bias * scale + bn_shift                  # (Cout,)

    adj_sm = jax.nn.softmax(logits, axis=1)                # row softmax
    eye = jnp.eye(logits.shape[0], dtype=jnp.float32)
    adj_diag = jnp.diagonal(adj_sm)                        # (J,)
    adj_off = adj_sm * (1.0 - eye)                         # (J, J)
    return dict(w01=w01, shift=shift_total, adj_off=adj_off, adj_diag=adj_diag)


# ---------------------------- pure-JAX reference ----------------------------

def graphconv_reference(x, params):
    """Literal transcription of the PyTorch forward (eval-mode BN)."""
    W, bias, logits, bn = (params["W"], params["bias"],
                           params["adj_logits"], params["bn"])
    h0 = jnp.einsum('bjc,cd->bjd', x, W[0])
    h1 = jnp.einsum('bjc,cd->bjd', x, W[1])
    adj = jax.nn.softmax(logits, axis=1)
    eye = jnp.eye(logits.shape[0], dtype=jnp.float32)
    out = (jnp.einsum('ij,bjd->bid', adj * eye, h0)
           + jnp.einsum('ij,bjd->bid', adj * (1.0 - eye), h1)
           + bias[None, None, :])
    scale = bn["gamma"] / jnp.sqrt(bn["var"] + bn["eps"])
    shift = bn["beta"] - bn["mean"] * scale
    out = out * scale[None, None, :] + shift[None, None, :]
    return jnp.maximum(out, 0.0)


# ----------------------------------- main -----------------------------------

if __name__ == "__main__":
    B, J = 2, 16                 # batch, graph nodes (joints)
    input_dim, output_dim = 64, 32

    key = jax.random.PRNGKey(0)
    k_param, k_x = jax.random.split(key, 2)

    # Deterministic skeleton-like adjacency: chain graph + self loops.
    adj = jnp.eye(J, dtype=jnp.float32)
    idx = jnp.arange(J - 1)
    adj = adj.at[idx, idx + 1].set(1.0)
    adj = adj.at[idx + 1, idx].set(1.0)

    params = make_graphconv_params(k_param, input_dim, output_dim, adj)
    folded = fold_graphconv_params(params)
    x = jax.random.normal(k_x, (B, J, input_dim), jnp.float32)

    @jax.jit
    def forward(x, folded):
        return graphconv_apply(x, folded, batch_tile=8, apply_relu=True)

    out = jax.block_until_ready(forward(x, folded))
    ref = jax.block_until_ready(graphconv_reference(x, params))

    assert out.shape == (B, J, output_dim), out.shape
    assert jnp.all(jnp.isfinite(out))
    assert jnp.allclose(out, ref, rtol=1e-3, atol=1e-3), float(
        jnp.max(jnp.abs(out - ref)))
    print("KERNEL_OK")
</pallas_src>

<mosaic_0001>
module attributes {stable_mosaic.version = 11 : i64} {
  func.func @_graphconv_kernel(%arg0: i32, %arg1: memref<32x64xf32, #tpu.memory_space<vmem>>, %arg2: memref<64x64xf32, #tpu.memory_space<vmem>>, %arg3: memref<32x32xf32, #tpu.memory_space<vmem>>, %arg4: memref<32x1xf32, #tpu.memory_space<vmem>>, %arg5: memref<1x32xf32, #tpu.memory_space<vmem>>, %arg6: memref<32x32xf32, #tpu.memory_space<vmem>>) attributes {dimension_semantics = [#tpu.dimension_semantics<parallel>], iteration_bounds = array<i64: 1>, scalar_prefetch = 0 : i64, scratch_operands = 0 : i64, tpu.core_type = #tpu.core_type<tc>, window_params = [{transform_indices = @transform_0, window_bounds = array<i64: 32, 64>}, {pipeline_mode = #tpu.pipeline_mode<synchronous>, transform_indices = @transform_1, window_bounds = array<i64: 64, 64>}, {pipeline_mode = #tpu.pipeline_mode<synchronous>, transform_indices = @transform_2, window_bounds = array<i64: 32, 32>}, {pipeline_mode = #tpu.pipeline_mode<synchronous>, transform_indices = @transform_3, window_bounds = array<i64: 32, 1>}, {pipeline_mode = #tpu.pipeline_mode<synchronous>, transform_indices = @transform_4, window_bounds = array<i64: 1, 32>}, {transform_indices = @transform_5, window_bounds = array<i64: 32, 32>}]} {
    %c0 = arith.constant 0 : index
    %c0_0 = arith.constant 0 : index
    %0 = vector.load %arg1[%c0, %c0_0] : memref<32x64xf32, #tpu.memory_space<vmem>>, vector<32x64xf32>
    %c0_1 = arith.constant 0 : index
    %c0_2 = arith.constant 0 : index
    %1 = vector.load %arg2[%c0_1, %c0_2] : memref<64x64xf32, #tpu.memory_space<vmem>>, vector<64x64xf32>
    %cst = arith.constant dense<0.000000e+00> : vector<32x64xf32>
    %2 = tpu.matmul %0, %1, %cst {dimension_numbers = #tpu.dot_dimension_numbers<[1], [0], [0], [1], [0, 0, 1, 1], [], []>} : vector<32x64xf32>, vector<64x64xf32>, vector<32x64xf32> -> vector<32x64xf32>
    %3 = vector.extract_strided_slice %2 {offsets = [0, 0], sizes = [32, 32], strides = [1, 1]} : vector<32x64xf32> to vector<32x32xf32>
    %4 = vector.extract_strided_slice %2 {offsets = [0, 32], sizes = [32, 32], strides = [1, 1]} : vector<32x64xf32> to vector<32x32xf32>
    %c0_3 = arith.constant 0 : index
    %c0_4 = arith.constant 0 : index
    %5 = vector.load %arg4[%c0_3, %c0_4] : memref<32x1xf32, #tpu.memory_space<vmem>>, vector<32x1xf32>
    %6 = vector.broadcast %5 : vector<32x1xf32> to vector<32x32xf32>
    %7 = arith.mulf %6, %3 : vector<32x32xf32>
    %c0_5 = arith.constant 0 : index
    %c0_6 = arith.constant 0 : index
    %8 = vector.load %arg3[%c0_5, %c0_6] : memref<32x32xf32, #tpu.memory_space<vmem>>, vector<32x32xf32>
    %cst_7 = arith.constant dense<0.000000e+00> : vector<32x32xf32>
    %9 = tpu.matmul %8, %4, %cst_7 {dimension_numbers = #tpu.dot_dimension_numbers<[1], [0], [0], [1], [0, 0, 1, 1], [], []>} : vector<32x32xf32>, vector<32x32xf32>, vector<32x32xf32> -> vector<32x32xf32>
    %10 = arith.addf %7, %9 : vector<32x32xf32>
    %c0_8 = arith.constant 0 : index
    %c0_9 = arith.constant 0 : index
    %11 = vector.load %arg5[%c0_8, %c0_9] : memref<1x32xf32, #tpu.memory_space<vmem>>, vector<1x32xf32>
    %12 = vector.broadcast %11 : vector<1x32xf32> to vector<32x32xf32>
    %13 = arith.addf %10, %12 : vector<32x32xf32>
    %cst_10 = arith.constant 0.000000e+00 : f32
    %14 = vector.broadcast %cst_10 : f32 to vector<32x32xf32>
    %15 = arith.maximumf %13, %14 : vector<32x32xf32>
    %c0_11 = arith.constant 0 : index
    %c0_12 = arith.constant 0 : index
    %16 = vector.load %arg6[%c0_11, %c0_12] : memref<32x32xf32, #tpu.memory_space<vmem>>, vector<32x32xf32>
    tpu.vector_store %arg6[%c0_11, %c0_12], %15 {strides = array<i32>} : memref<32x32xf32, #tpu.memory_space<vmem>>, vector<32x32xf32>,
    return
  }
  func.func @transform_0(%arg0: i32) -> (i32, i32) {
    %c0_i32 = arith.constant 0 : i32
    %c0_i32_0 = arith.constant 0 : i32
    return %arg0, %c0_i32 : i32, i32
  }
  func.func @transform_1(%arg0: i32) -> (i32, i32) {
    %c0_i32 = arith.constant 0 : i32
    %c0_i32_0 = arith.constant 0 : i32
    %c0_i32_1 = arith.constant 0 : i32
    return %c0_i32, %c0_i32_0 : i32, i32
  }
  func.func @transform_2(%arg0: i32) -> (i32, i32) {
    %c0_i32 = arith.constant 0 : i32
    %c0_i32_0 = arith.constant 0 : i32
    %c0_i32_1 = arith.constant 0 : i32
    return %c0_i32, %c0_i32_0 : i32, i32
  }
  func.func @transform_3(%arg0: i32) -> (i32, i32) {
    %c0_i32 = arith.constant 0 : i32
    %c0_i32_0 = arith.constant 0 : i32
    %c0_i32_1 = arith.constant 0 : i32
    return %c0_i32, %c0_i32_0 : i32, i32
  }
  func.func @transform_4(%arg0: i32) -> (i32, i32) {
    %c0_i32 = arith.constant 0 : i32
    %c0_i32_0 = arith.constant 0 : i32
    %c0_i32_1 = arith.constant 0 : i32
    return %c0_i32, %c0_i32_0 : i32, i32
  }
  func.func @transform_5(%arg0: i32) -> (i32, i32) {
    %c0_i32 = arith.constant 0 : i32
    %c0_i32_0 = arith.constant 0 : i32
    return %arg0, %c0_i32 : i32, i32
  }
}

</mosaic_0001>

<bundles_post_ra>
// kernel: tile.8
= control target key start
LH: loop header
LB: loop body
LE: loop exit
PB: predicated region body
PF: predicated region fallthrough
CT: control target
= control target key end

     0   :  { %s22_s0 = inlined_call_operand.vmem [shape: f32[16], index: 0, kind: input, shape index: {}]   ;;  %s23_s1 = inlined_call_operand.vmem [shape: f32[2,16], index: 1, kind: output, shape index: {}]  }
   0x1   :  { %v4_v0 = vld [vmem:[%s22_s0] ss:$0 sm:$0xff] }
   0x2   :  { %5 = vst [vmem:[%s23_s1] sm:$0x3] %v4_v0 }

// kernel: tile.0
= control target key start
LH: loop header
LB: loop body
LE: loop exit
PB: predicated region body
PF: predicated region fallthrough
CT: control target
= control target key end

     0   :  { %s130_s8 = smov 127   ;;  %s131_s9 = smov 123   ;;  %vm7_vm0 = vcmask 7168   ;;  %s221_s0 = inlined_call_operand.vmem [shape: f32[2,16], index: 0, kind: input, shape index: {}]   ;;  %s222_s1 = inlined_call_operand.vmem [shape: f32[32,1], index: 1, kind: output, shape index: {}]  }
   0x1   :  { %v4_v0 = vld [vmem:[%s221_s0] sm:$0x3]  ;;  %s129_s0 = smov 125   ;;  %s132_s10 = smov 124  }
   0x2   :  { %5 = vst [vmem:[#allocation0] sm:$0x3] %v4_v0  ;;  %s133_s11 = smov 126   ;;  %s134_s12 = smov 122  }
   0x3   :  { %s135_s13 = smov 120   ;;  %s136_s14 = smov 121  }
   0x4   :  { %s137_s15 = smov 119   ;;  %s138_s16 = smov 117  }
   0x5   :  { %s139_s17 = smov 118   ;;  %s140_s18 = smov 116  }
   0x6   :  { %s141_s19 = smov 114   ;;  %s142_s20 = smov 115  }
   0x7   :  { %s143_s21 = smov 113  }
   0x9   :  { %v21_v1 = vld [vmem:[#allocation0] sm:$0x3]  }
   0xa   :  { %v9_v2 = vld [vmem:[#allocation0] sm:$0x3]   ;;  %22 = vrot.lane.b32.xlu1 %v21_v1, %s129_s0 }
   0xb   :  { %10 = vrot.lane.b32.xlu0 %v9_v2, %s130_s8  ;;  %v33_v3 = vld [vmem:[#allocation0] sm:$0x3]  }
   0xc   :  { %34 = vrot.lane.b32.xlu2 %v33_v3, %s131_s9  ;;  %v27_v4 = vld [vmem:[#allocation0] sm:$0x3]  }
   0xd   :  { %v15_v5 = vld [vmem:[#allocation0] sm:$0x3]  }
   0xe   :  { %v39_v6 = vld [vmem:[#allocation0] sm:$0x3]  }
   0xf   :  { %v51_v7 = vld [vmem:[#allocation0] sm:$0x3]  }
  0x10   :  { %v45_v8 = vld [vmem:[#allocation0] sm:$0x3]  }
  0x11   :  { %v57_v9 = vld [vmem:[#allocation0] sm:$0x3]  }
  0x12   :  { %28 = vrot.lane.b32.xlu1 %v27_v4, %s132_s10  ;;  %v69_v10 = vld [vmem:[#allocation0] sm:$0x3]  }
  0x13   :  { %16 = vrot.lane.b32.xlu0 %v15_v5, %s133_s11  ;;  %v63_v11 = vld [vmem:[#allocation0] sm:$0x3]  }
  0x14   :  { %40 = vrot.lane.b32.xlu2 %v39_v6, %s134_s12  ;;  %v75_v12 = vld [vmem:[#allocation0] sm:$0x3]  }
  0x15   :  { %v87_v13 = vld [vmem:[#allocation0] sm:$0x3]  }
  0x16   :  { %v81_v14 = vld [vmem:[#allocation0] sm:$0x3]  }
  0x17   :  { %v93_v15 = vld [vmem:[#allocation0] sm:$0x3]  }
  0x18   :  { %v6_v21 = vld [vmem:[#allocation0] sm:$0x3]  }
  0x19   :  { %8 = vst.msk [vmem:[%s222_s1] ss:$16 sm:$0x3] %vm7_vm0, %v6_v21  }
  0x1a   :  { %52 = vrot.lane.b32.xlu1 %v51_v7, %s135_s13 }
  0x1b   :  { %46 = vrot.lane.b32.xlu0 %v45_v8, %s136_s14 }
  0x1c   :  { %58 = vrot.lane.b32.xlu2 %v57_v9, %s137_s15 }
  0x22   :  { %70 = vrot.lane.b32.xlu1 %v69_v10, %s138_s16 }
  0x23   :  { %64 = vrot.lane.b32.xlu0 %v63_v11, %s139_s17 }
  0x24   :  { %76 = vrot.lane.b32.xlu2 %v75_v12, %s140_s18 }
  0x2a   :  { %88 = vrot.lane.b32.xlu1 %v87_v13, %s141_s19 }
  0x2b   :  { %82 = vrot.lane.b32.xlu0 %v81_v14, %s142_s20 }
  0x2c   :  { %94 = vrot.lane.b32.xlu2 %v93_v15, %s143_s21 }
  0x66   :  { %v35_v16 = vpop.permute.xlu2 %34  }
  0x67   :  { %103 = vst.msk [vmem:[%s222_s1 + $0x5] ss:$16 sm:$0x3] %vm7_vm0, %v35_v16  }
  0x6e   :  { %v41_v17 = vpop.permute.xlu2 %40  }
  0x6f   :  { %104 = vst.msk [vmem:[%s222_s1 + $0x6] ss:$16 sm:$0x3] %vm7_vm0, %v41_v17  }
  0x76   :  { %v59_v18 = vpop.permute.xlu2 %58  }
  0x77   :  { %107 = vst.msk [vmem:[%s222_s1 + $0x9] ss:$16 sm:$0x3] %vm7_vm0, %v59_v18  }
  0x7c   :  { %v23_v19 = vpop.permute.xlu1 %22  }
  0x7d   :  { %v11_v20 = vpop.permute.xlu0 %10   ;;  %101 = vst.msk [vmem:[%s222_s1 + $0x3] ss:$16 sm:$0x3] %vm7_vm0, %v23_v19  }
  0x7e   :  { %99 = vst.msk [vmem:[%s222_s1 + $0x1] ss:$16 sm:$0x3] %vm7_vm0, %v11_v20   ;;  %v77_v22 = vpop.permute.xlu2 %76  }
  0x7f   :  { %110 = vst.msk [vmem:[%s222_s1 + $0xc] ss:$16 sm:$0x3] %vm7_vm0, %v77_v22  }
  0x84   :  { %v29_v23 = vpop.permute.xlu1 %28  }
  0x85   :  { %v17_v24 = vpop.permute.xlu0 %16   ;;  %102 = vst.msk [vmem:[%s222_s1 + $0x4] ss:$16 sm:$0x3] %vm7_vm0, %v29_v23  }
  0x86   :  { %100 = vst.msk [vmem:[%s222_s1 + $0x2] ss:$16 sm:$0x3] %vm7_vm0, %v17_v24   ;;  %v95_v25 = vpop.permute.xlu2 %94  }
  0x87   :  { %113 = vst.msk [vmem:[%s222_s1 + $0xf] ss:$16 sm:$0x3] %vm7_vm0, %v95_v25  }
  0x8c   :  { %v53_v26 = vpop.permute.xlu1 %52  }
  0x8d   :  { %v47_v27 = vpop.permute.xlu0 %46   ;;  %106 = vst.msk [vmem:[%s222_s1 + $0x8] ss:$16 sm:$0x3] %vm7_vm0, %v53_v26  }
  0x8e   :  { %105 = vst.msk [vmem:[%s222_s1 + $0x7] ss:$16 sm:$0x3] %vm7_vm0, %v47_v27  }
  0x94   :  { %v71_v28 = vpop.permute.xlu1 %70  }
  0x95   :  { %v65_v29 = vpop.permute.xlu0 %64   ;;  %109 = vst.msk [vmem:[%s222_s1 + $0xb] ss:$16 sm:$0x3] %vm7_vm0, %v71_v28  }
  0x96   :  { %108 = vst.msk [vmem:[%s222_s1 + $0xa] ss:$16 sm:$0x3] %vm7_vm0, %v65_v29  }
  0x9c   :  { %v89_v30 = vpop.permute.xlu1 %88  }
  0x9d   :  { %v83_v31 = vpop.permute.xlu0 %82   ;;  %112 = vst.msk [vmem:[%s222_s1 + $0xe] ss:$16 sm:$0x3] %vm7_vm0, %v89_v30  }
  0x9e   :  { %111 = vst.msk [vmem:[%s222_s1 + $0xd] ss:$16 sm:$0x3] %vm7_vm0, %v83_v31  }

// kernel: forward.1
= control target key start
LH: loop header
LB: loop body
LE: loop exit
PB: predicated region body
PF: predicated region fallthrough
CT: control target
= control target key end

     0   :  { %v268_v3 = vmov 0   ;;  %s377_s0 = inlined_call_operand.vmem [shape: f32[32,64], index: 0, kind: input, shape index: {}]   ;;  %s378_s1 = inlined_call_operand.vmem [shape: f32[64,64], index: 1, kind: input, shape index: {}]   ;;  %s379_s2 = inlined_call_operand.vmem [shape: f32[32,32], index: 2, kind: input, shape index: {}]   ;;  %s380_s3 = inlined_call_operand.vmem [shape: f32[32,1], index: 3, kind: input, shape index: {}]   ;;  %s381_s4 = inlined_call_operand.vmem [shape: f32[1,32], index: 4, kind: input, shape index: {}]   ;;  %s382_s5 = inlined_call_operand.hbm [shape: f32[32,32], index: 5, kind: output, shape index: {}]  }
   0x1   :  { %v32_v0 = vld [vmem:[%s378_s1 + $0x38] sm:$0xff]  ;;  %v31_v1 = vld [vmem:[%s378_s1 + $0x30] sm:$0xff]  ;;  %v30_v2 = vld [vmem:[%s378_s1 + $0x28] sm:$0xff]  ;;  %238 = vset.pattern.permute.xlu1 %v268_v3  ;;  %239 = vset.pattern.permute.xlu2 %v268_v3 }
   0x2   :  { %211 = vmatpush.msra.mxu2 %v32_v0  ;;  %54 = vmatpush.msra.mxu0 %v32_v0  ;;  %v29_v4 = vld [vmem:[%s378_s1 + $0x20] sm:$0xff]  ;;  %v77_v6 = vld [vmem:[%s380_s3 + $0x10] sm:$0xff] }
   0x3   :  { %v75_v5 = vld [vmem:[%s380_s3] sm:$0xff]  ;;  %240 = vset.pattern.permute.xlu0 %v268_v3 }
   0x4   :  { %212 = vmatpush.msra.mxu2 %v31_v1  ;;  %55 = vmatpush.msra.mxu0 %v31_v1 }
   0x6   :  { %213 = vmatpush.msra.mxu2 %v30_v2  ;;  %56 = vmatpush.msra.mxu0 %v30_v2 }
   0x7   :  { %10 = vsyncpa [#allocation3], 0  ;;  %v28_v7 = vld [vmem:[%s378_s1 + $0x18] sm:$0xff]  ;;  %81 = vperm.xlu1 %238, %v75_v5   ;;  %91 = vperm.xlu2 %239, %v77_v6   ;;  %v27_v8 = vld [vmem:[%s378_s1 + $0x10] sm:$0xff]  ;;  %vm33_vm0 = vcmask 523264   ;;  %s269_s23 = smov 96  }
   0x8   :  { %214 = vmatpush.msra.mxu2 %v29_v4  ;;  %57 = vmatpush.msra.mxu0 %v29_v4  ;;  %v26_v9 = vld [vmem:[%s378_s1 + $0x8] sm:$0xff]  ;;  %v78_v11 = vld [vmem:[%s380_s3 + $0x18] sm:$0xff]  ;;  %v25_v12 = vld [vmem:[%s378_s1] sm:$0xff]  ;;  %vm123_vm1 = vcmask 261120   ;;  %s191_s10 = sshll.u32 %s382_s5, 4  ;;  %s271_s11 = smov 128   ;;  %s192_s10 = int_to_ptr.hbm [resolvable:$true] %s191_s10 }
   0x9   :  { %v76_v10 = vld [vmem:[%s380_s3 + $0x8] sm:$0xff]  ;;  %v23_v13 = vld [vmem:[%s377_s0 + $0x10] sm:$0xff]  ;;  %v21_v14 = vld [vmem:[%s377_s0] sm:$0xff]  ;;  %s272_s12 = smov 8  }
   0xa   :  { %215 = vmatpush.msra.mxu2 %v28_v7  ;;  %58 = vmatpush.msra.mxu0 %v28_v7  ;;  %v24_v15 = vld [vmem:[%s377_s0 + $0x18] sm:$0xff]  ;;  %v22_v16 = vld [vmem:[%s377_s0 + $0x8] sm:$0xff]  ;;  %v103_v29 = vld [vmem:[%s379_s2] sm:$0xff] }
   0xb   :  { %v104_v30 = vld [vmem:[%s379_s2 + $0x8] sm:$0xff]  ;;  %v105_v31 = vld [vmem:[%s379_s2 + $0x10] sm:$0xff]  ;;  %v106_v32 = vld [vmem:[%s379_s2 + $0x18] sm:$0xff]  ;;  %s270_s2 = smov [#allocation2]  }
   0xc   :  { %216 = vmatpush.msra.mxu2 %v27_v8  ;;  %59 = vmatpush.msra.mxu0 %v27_v8  ;;  %v241_v35 = vld [vmem:[%s381_s4] ss:$0 sm:$0xff]  ;;  %s189_s4 = sshll.u32 %s270_s2, 4  ;;  %s190_s4 = int_to_ptr.vmem [resolvable:$true] %s189_s4 }
   0xe   :  { %217 = vmatpush.msra.mxu2 %v26_v9  ;;  %60 = vmatpush.msra.mxu0 %v26_v9 }
   0xf   :  { %86 = vperm.xlu1 %238, %v76_v10   ;;  %96 = vperm.xlu2 %239, %v78_v11  }
  0x10   :  { %218 = vmatpush.msra.mxu2 %v25_v12  ;;  %61 = vmatpush.msra.mxu0 %v25_v12 }
  0x11   :  { %205 = vmatmul.msk.f32.vlgmr.msra.gmra.mxu2 %vm33_vm0, %v23_v13  ;;  %203 = vmatmul.msk.f32.vlgmr.msra.gmra.mxu0 %vm33_vm0, %v21_v14 }
  0x19   :  { %206 = vmatmul.msk.f32.gmra.mxu2 %vm33_vm0, %v24_v15  ;;  %204 = vmatmul.msk.f32.gmra.mxu0 %vm33_vm0, %v22_v16 }
  0x61   :  { %v92_v44 = vpop.permute.xlu2 %91 }
  0x69   :  { %v97_v51 = vpop.permute.xlu2 %96 }
  0x79   :  { %v82_v33 = vpop.permute.xlu1 %81 }
  0x81   :  { %v87_v38 = vpop.permute.xlu1 %86 }
  0x8e   :  { %v63_v18 = vpop.f32.mrf.mxu0 }
  0x8f   :  { %v99_v34 = vmul.f32 %v82_v33, %v63_v18 }
  0x94   :  { %v69_v17 = vpop.f32.mrf.mxu2 }
  0x95   :  { %v101_v47 = vmul.f32 %v92_v44, %v69_v17 }
  0x96   :  { %v66_v21 = vpop.f32.mrf.mxu0 }
  0x97   :  { %v233_v22 = vpack.i.bf16 %v63_v18, %v66_v21  ;;  %v100_v40 = vmul.f32 %v87_v38, %v66_v21 }
  0x9c   :  { %v72_v19 = vpop.f32.mrf.mxu2 }
  0x9d   :  { %v228_v20 = vpack.i.bf16 %v69_v17, %v72_v19  ;;  %v102_v53 = vmul.f32 %v97_v51, %v72_v19 }
  0x9f   :  { %229 = vrot.lane.b32.xlu0 %v228_v20, %s269_s23 }
  0xa7   :  { %234 = vrot.lane.b32.xlu0 %v233_v22, %s269_s23 }
 0x111   :  { %v230_v23 = vpop.permute.xlu0 %229 }
 0x112   :  { %v231_v24 = vunpack.i.l.bf16 %v230_v23  ;;  %v232_v25 = vunpack.i.h.bf16 %v230_v23 }
 0x114   :  { %148 = vmatpush.msra.mxu1 %v231_v24  ;;  %219 = vmatpush.msra.mxu3 %v231_v24 }
 0x116   :  { %149 = vmatpush.msra.mxu1 %v232_v25  ;;  %220 = vmatpush.msra.mxu3 %v232_v25 }
 0x119   :  { %v235_v26 = vpop.permute.xlu0 %234 }
 0x11a   :  { %v236_v27 = vunpack.i.l.bf16 %v235_v26  ;;  %v237_v28 = vunpack.i.h.bf16 %v235_v26 }
 0x11c   :  { %150 = vmatpush.msra.mxu1 %v236_v27  ;;  %221 = vmatpush.msra.mxu3 %v236_v27 }
 0x11e   :  { %151 = vmatpush.msra.mxu1 %v237_v28  ;;  %222 = vmatpush.msra.mxu3 %v237_v28 }
 0x11f   :  { %207 = vmatmul.msk.f32.vlgmr.msra.gmra.mxu1 %vm123_vm1, %v103_v29  ;;  %208 = vmatmul.msk.f32.vlgmr.msra.gmra.mxu3 %vm123_vm1, %v104_v30 }
 0x127   :  { %209 = vmatmul.msk.f32.gmra.mxu3 %vm123_vm1, %v105_v31 }
 0x12f   :  { %210 = vmatmul.msk.f32.gmra.mxu3 %vm123_vm1, %v106_v32 }
 0x19c   :  { %v153_v36 = vpop.f32.mrf.mxu1 }
 0x19d   :  { %v165_v37 = vadd.f32 %v153_v36, %v99_v34 }
 0x19f   :  { %v173_v39 = vadd.f32 %v241_v35, %v165_v37 }
 0x1a1   :  { %v177_v41 = vmax.f32 %v173_v39, 0.0 }
 0x1a2   :  { %v156_v42 = vpop.f32.mrf.mxu3 }
 0x1a3   :  { %181 = vst.msk [vmem:[#allocation2] sm:$0xff] %vm123_vm1, %v177_v41  ;;  %v166_v43 = vadd.f32 %v156_v42, %v100_v40 }
 0x1a5   :  { %v174_v45 = vadd.f32 %v241_v35, %v166_v43 }
 0x1a7   :  { %v178_v46 = vmax.f32 %v174_v45, 0.0 }
 0x1a9   :  { %182 = vst.msk [vmem:[#allocation2 + $0x8] sm:$0xff] %vm123_vm1, %v178_v46 }
 0x1aa   :  { %v159_v48 = vpop.f32.mrf.mxu3 }
 0x1ab   :  { %v167_v49 = vadd.f32 %v159_v48, %v101_v47 }
 0x1ad   :  { %v175_v50 = vadd.f32 %v241_v35, %v167_v49 }
 0x1af   :  { %v179_v52 = vmax.f32 %v175_v50, 0.0 }
 0x1b1   :  { %183 = vst.msk [vmem:[#allocation2 + $0x10] sm:$0xff] %vm123_vm1, %v179_v52 }
 0x1b2   :  { %v162_v54 = vpop.f32.mrf.mxu3 }
 0x1b3   :  { %v168_v55 = vadd.f32 %v162_v54, %v102_v53 }
 0x1b5   :  { %v176_v56 = vadd.f32 %v241_v35, %v168_v55 }
 0x1b7   :  { %v180_v57 = vmax.f32 %v176_v56, 0.0 }
 0x1b9   :  { %184 = vst.msk [vmem:[#allocation2 + $0x18] sm:$0xff] %vm123_vm1, %v180_v57 }
 0x1ba   :  { %197 = dma.vmem_to_hbm [thread:$0]  %s190_s4, 512, %s192_s10, [#allocation3], %s271_s11, %s271_s11, %s272_s12  }
 0x1bb   :  { %266 = dma.done.wait [#allocation3], 512  }
 0x1bc   :  { %267 = vsyncadd [#allocation3], 4294966784 }
 0x1bd   :  { %202 = vsyncpa [#allocation3], 1 }

</bundles_post_ra>
